<compile_context>
chip_gen: v6e
topology: v6e:2x2x1
jax: 0.10.0
libtpu: 0.0.40
codegen_flags: <defaults>
</compile_context>

<pallas_src>
import functools

import numpy as np
import jax
import jax.numpy as jnp
from jax.experimental import pallas as pl
from jax.experimental.pallas import tpu as pltpu

KERNEL = 3
STRIDE = 3                    # PyTorch MaxPool2d default: stride = kernel_size
KK = KERNEL * KERNEL          # 9 window slots

TARGET_BLOCK_BYTES = 8 * 1024 * 1024    # per input buffer (double-buffered)
VMEM_LIMIT_BYTES = 48 * 1024 * 1024     # headroom, still < v7x 64 MiB physical


def _out_size_ceil(size):
    # PyTorch ceil_mode output size (padding=0), with the "last window must
    # start inside the input" correction.
    out = -(-(size - KERNEL) // STRIDE) + 1
    if (out - 1) * STRIDE >= size:
        out -= 1
    return out


def _pad_value(dtype):
    # Large finite negative value: (a) never wins a max against real data,
    # (b) stays finite through the selection matmuls (-inf * 0 would be NaN),
    # (c) exactly representable in bf16 so the hi/lo split stays clean.
    if dtype == jnp.float16:
        return float(jnp.finfo(jnp.float16).min)
    return float(jnp.finfo(jnp.bfloat16).min)
    # TODO(synk): integer dtypes would need a compare/select (non-MXU) path;
    # PyTorch MaxPool2d is float-only in practice, so it is not implemented.


@functools.lru_cache(maxsize=None)
def _selection_matrices(wp, wo):
    """0/1 matrices S[s] (L, Wo): column wo selects lane kh*wp + 3*wo + kw."""
    l = KERNEL * wp
    sel = np.zeros((KK, l, wo), np.float32)
    cols = np.arange(wo)
    for kh in range(KERNEL):
        for kw in range(KERNEL):
            sel[kh * KERNEL + kw, kh * wp + STRIDE * cols + kw, cols] = 1.0
    return sel


def _choose_row_tile(rows, row_bytes, dtype):
    """Rows per grid step: byte-budgeted, dtype-aware sublane granularity."""
    sub = max(8, 32 // jnp.dtype(dtype).itemsize)   # 8 f32 / 16 bf16 / 32 int8
    r = max(1, TARGET_BLOCK_BYTES // max(row_bytes, 1))
    if r >= rows:
        return rows          # single block: full-extent row dim, no alignment needed
    return max(sub, (r // sub) * sub)


def _maxpool_kernel(x_ref, s_ref, o_ref):
    # x_ref : (R, L)       one output row's window data per sublane-row,
    #                      lane l = kh*Wp + 3*wo + kw  (L = 3*Wp)
    # s_ref : (KK, L, Wo)  constant 0/1 selection matrix per window slot
    # o_ref : (R, Wo)
    v = x_ref[...].astype(jnp.float32)
    # hi/lo split => selection matmul is exact even on a bf16-operand MXU path
    # (v_hi is bf16-representable; |v_lo| <= 2^-9 |v|, so any residual rounding
    #  is <= ~4e-6 relative; on an exact-f32 MXU path the result is bit-exact).
    v_hi = v.astype(jnp.bfloat16).astype(jnp.float32)
    v_lo = v - v_hi

    def pick(slot):
        sel = s_ref[slot]                                   # (L, Wo)
        return (jnp.dot(v_hi, sel, preferred_element_type=jnp.float32)
                + jnp.dot(v_lo, sel, preferred_element_type=jnp.float32))

    m = pick(0)
    for slot in range(1, KK):          # unrolled 9-way max chain (VPU only)
        m = jnp.maximum(m, pick(slot))
    o_ref[...] = m.astype(o_ref.dtype)


@jax.jit
def maxpool2d_ceil(x):
    """MaxPool2d(kernel_size=3, stride=3, padding=0, ceil_mode=True) on NCHW."""
    N, C, H, W = x.shape
    Ho, Wo = _out_size_ceil(H), _out_size_ceil(W)
    Hp, Wp = KERNEL * Ho, KERNEL * Wo
    pad_val = _pad_value(x.dtype)

    # Single pad: ceil-mode coverage only (<= 2 extra rows / cols of pad_val).
    if (Hp, Wp) != (H, W):
        xp = jnp.pad(x, ((0, 0), (0, 0), (0, Hp - H), (0, Wp - W)),
                     constant_values=pad_val)
    else:
        xp = x

    rows = N * C * Ho
    L = KERNEL * Wp
    xw = xp.reshape(rows, L)        # pure reshape — no transpose, no extra copy

    sel = jnp.asarray(_selection_matrices(Wp, Wo))

    row_bytes = L * x.dtype.itemsize
    R = _choose_row_tile(rows, row_bytes, x.dtype)
    grid = (pl.cdiv(rows, R),)      # possible partial tail block: OOB reads feed
                                    # only OOB output rows, whose writes Pallas masks.

    out = pl.pallas_call(
        _maxpool_kernel,
        out_shape=jax.ShapeDtypeStruct((rows, Wo), x.dtype),
        grid=grid,
        in_specs=[
            pl.BlockSpec((R, L), lambda i: (i, 0)),
            pl.BlockSpec((KK, L, Wo), lambda i: (0, 0, 0)),   # small constant
        ],
        out_specs=pl.BlockSpec((R, Wo), lambda i: (i, 0)),
        compiler_params=pltpu.CompilerParams(
            dimension_semantics=("parallel",),
            vmem_limit_bytes=VMEM_LIMIT_BYTES,
        ),
    )(xw, sel)

    return out.reshape(N, C, Ho, Wo)


def _reference(x):
    # Pure-JAX reference with identical ceil-mode semantics.
    N, C, H, W = x.shape
    Ho, Wo = _out_size_ceil(H), _out_size_ceil(W)
    Hp, Wp = KERNEL * Ho, KERNEL * Wo
    pad_val = jnp.asarray(_pad_value(x.dtype), x.dtype)
    xp = jnp.pad(x, ((0, 0), (0, 0), (0, Hp - H), (0, Wp - W)),
                 constant_values=pad_val)
    return jax.lax.reduce_window(
        xp, pad_val, jax.lax.max,
        window_dimensions=(1, 1, KERNEL, KERNEL),
        window_strides=(1, 1, STRIDE, STRIDE),
        padding="VALID")


if __name__ == "__main__":
    # Primary test (module's implied toy shapes): exercises ceil-mode padding.
    x = jax.random.normal(jax.random.PRNGKey(0), (2, 4, 16, 16), dtype=jnp.float32)
    out = jax.block_until_ready(maxpool2d_ceil(x))
    ref = _reference(x)
    assert out.shape == (2, 4, 6, 6), out.shape
    assert jnp.allclose(out, ref, rtol=1e-4, atol=1e-5), "mismatch vs reference (16x16)"

    # Secondary test: ragged spatial dims (ceil-mode padding on both axes,
    # different Ho/Wo, larger row count).
    x2 = jax.random.normal(jax.random.PRNGKey(1), (2, 8, 37, 53), dtype=jnp.float32)
    out2 = jax.block_until_ready(maxpool2d_ceil(x2))
    ref2 = _reference(x2)
    assert out2.shape == ref2.shape, (out2.shape, ref2.shape)
    assert jnp.allclose(out2, ref2, rtol=1e-4, atol=1e-5), "mismatch vs reference (37x53)"

    print("KERNEL_OK")
</pallas_src>

<mosaic_0001>
module attributes {stable_mosaic.version = 11 : i64} {
  func.func @_maxpool_kernel(%arg0: i32, %arg1: memref<48x54xf32, #tpu.memory_space<vmem>>, %arg2: memref<9x54x6xf32, #tpu.memory_space<vmem>>, %arg3: memref<48x6xf32, #tpu.memory_space<vmem>>) attributes {dimension_semantics = [#tpu.dimension_semantics<parallel>], iteration_bounds = array<i64: 1>, scalar_prefetch = 0 : i64, scratch_operands = 0 : i64, tpu.core_type = #tpu.core_type<tc>, window_params = [{transform_indices = @transform_0, window_bounds = array<i64: 48, 54>}, {pipeline_mode = #tpu.pipeline_mode<synchronous>, transform_indices = @transform_1, window_bounds = array<i64: 9, 54, 6>}, {transform_indices = @transform_2, window_bounds = array<i64: 48, 6>}]} {
    %c0 = arith.constant 0 : index
    %c0_0 = arith.constant 0 : index
    %0 = vector.load %arg1[%c0, %c0_0] : memref<48x54xf32, #tpu.memory_space<vmem>>, vector<48x54xf32>
    %1 = arith.truncf %0 : vector<48x54xf32> to vector<48x54xbf16>
    %2 = arith.extf %1 : vector<48x54xbf16> to vector<48x54xf32>
    %3 = arith.subf %0, %2 : vector<48x54xf32>
    %c0_1 = arith.constant 0 : index
    %c0_2 = arith.constant 0 : index
    %c0_3 = arith.constant 0 : index
    %4 = vector.load %arg2[%c0_1, %c0_2, %c0_3] : memref<9x54x6xf32, #tpu.memory_space<vmem>>, vector<1x54x6xf32>
    %5 = vector.shape_cast %4 : vector<1x54x6xf32> to vector<54x6xf32>
    %cst = arith.constant dense<0.000000e+00> : vector<48x6xf32>
    %6 = tpu.matmul %2, %5, %cst {dimension_numbers = #tpu.dot_dimension_numbers<[1], [0], [0], [1], [0, 0, 1, 1], [], []>} : vector<48x54xf32>, vector<54x6xf32>, vector<48x6xf32> -> vector<48x6xf32>
    %cst_4 = arith.constant dense<0.000000e+00> : vector<48x6xf32>
    %7 = tpu.matmul %3, %5, %cst_4 {dimension_numbers = #tpu.dot_dimension_numbers<[1], [0], [0], [1], [0, 0, 1, 1], [], []>} : vector<48x54xf32>, vector<54x6xf32>, vector<48x6xf32> -> vector<48x6xf32>
    %8 = arith.addf %6, %7 : vector<48x6xf32>
    %c1 = arith.constant 1 : index
    %c0_5 = arith.constant 0 : index
    %c0_6 = arith.constant 0 : index
    %9 = vector.load %arg2[%c1, %c0_5, %c0_6] : memref<9x54x6xf32, #tpu.memory_space<vmem>>, vector<1x54x6xf32>
    %10 = vector.shape_cast %9 : vector<1x54x6xf32> to vector<54x6xf32>
    %cst_7 = arith.constant dense<0.000000e+00> : vector<48x6xf32>
    %11 = tpu.matmul %2, %10, %cst_7 {dimension_numbers = #tpu.dot_dimension_numbers<[1], [0], [0], [1], [0, 0, 1, 1], [], []>} : vector<48x54xf32>, vector<54x6xf32>, vector<48x6xf32> -> vector<48x6xf32>
    %cst_8 = arith.constant dense<0.000000e+00> : vector<48x6xf32>
    %12 = tpu.matmul %3, %10, %cst_8 {dimension_numbers = #tpu.dot_dimension_numbers<[1], [0], [0], [1], [0, 0, 1, 1], [], []>} : vector<48x54xf32>, vector<54x6xf32>, vector<48x6xf32> -> vector<48x6xf32>
    %13 = arith.addf %11, %12 : vector<48x6xf32>
    %14 = arith.maximumf %8, %13 : vector<48x6xf32>
    %c2 = arith.constant 2 : index
    %c0_9 = arith.constant 0 : index
    %c0_10 = arith.constant 0 : index
    %15 = vector.load %arg2[%c2, %c0_9, %c0_10] : memref<9x54x6xf32, #tpu.memory_space<vmem>>, vector<1x54x6xf32>
    %16 = vector.shape_cast %15 : vector<1x54x6xf32> to vector<54x6xf32>
    %cst_11 = arith.constant dense<0.000000e+00> : vector<48x6xf32>
    %17 = tpu.matmul %2, %16, %cst_11 {dimension_numbers = #tpu.dot_dimension_numbers<[1], [0], [0], [1], [0, 0, 1, 1], [], []>} : vector<48x54xf32>, vector<54x6xf32>, vector<48x6xf32> -> vector<48x6xf32>
    %cst_12 = arith.constant dense<0.000000e+00> : vector<48x6xf32>
    %18 = tpu.matmul %3, %16, %cst_12 {dimension_numbers = #tpu.dot_dimension_numbers<[1], [0], [0], [1], [0, 0, 1, 1], [], []>} : vector<48x54xf32>, vector<54x6xf32>, vector<48x6xf32> -> vector<48x6xf32>
    %19 = arith.addf %17, %18 : vector<48x6xf32>
    %20 = arith.maximumf %14, %19 : vector<48x6xf32>
    %c3 = arith.constant 3 : index
    %c0_13 = arith.constant 0 : index
    %c0_14 = arith.constant 0 : index
    %21 = vector.load %arg2[%c3, %c0_13, %c0_14] : memref<9x54x6xf32, #tpu.memory_space<vmem>>, vector<1x54x6xf32>
    %22 = vector.shape_cast %21 : vector<1x54x6xf32> to vector<54x6xf32>
    %cst_15 = arith.constant dense<0.000000e+00> : vector<48x6xf32>
    %23 = tpu.matmul %2, %22, %cst_15 {dimension_numbers = #tpu.dot_dimension_numbers<[1], [0], [0], [1], [0, 0, 1, 1], [], []>} : vector<48x54xf32>, vector<54x6xf32>, vector<48x6xf32> -> vector<48x6xf32>
    %cst_16 = arith.constant dense<0.000000e+00> : vector<48x6xf32>
    %24 = tpu.matmul %3, %22, %cst_16 {dimension_numbers = #tpu.dot_dimension_numbers<[1], [0], [0], [1], [0, 0, 1, 1], [], []>} : vector<48x54xf32>, vector<54x6xf32>, vector<48x6xf32> -> vector<48x6xf32>
    %25 = arith.addf %23, %24 : vector<48x6xf32>
    %26 = arith.maximumf %20, %25 : vector<48x6xf32>
    %c4 = arith.constant 4 : index
    %c0_17 = arith.constant 0 : index
    %c0_18 = arith.constant 0 : index
    %27 = vector.load %arg2[%c4, %c0_17, %c0_18] : memref<9x54x6xf32, #tpu.memory_space<vmem>>, vector<1x54x6xf32>
    %28 = vector.shape_cast %27 : vector<1x54x6xf32> to vector<54x6xf32>
    %cst_19 = arith.constant dense<0.000000e+00> : vector<48x6xf32>
    %29 = tpu.matmul %2, %28, %cst_19 {dimension_numbers = #tpu.dot_dimension_numbers<[1], [0], [0], [1], [0, 0, 1, 1], [], []>} : vector<48x54xf32>, vector<54x6xf32>, vector<48x6xf32> -> vector<48x6xf32>
    %cst_20 = arith.constant dense<0.000000e+00> : vector<48x6xf32>
    %30 = tpu.matmul %3, %28, %cst_20 {dimension_numbers = #tpu.dot_dimension_numbers<[1], [0], [0], [1], [0, 0, 1, 1], [], []>} : vector<48x54xf32>, vector<54x6xf32>, vector<48x6xf32> -> vector<48x6xf32>
    %31 = arith.addf %29, %30 : vector<48x6xf32>
    %32 = arith.maximumf %26, %31 : vector<48x6xf32>
    %c5 = arith.constant 5 : index
    %c0_21 = arith.constant 0 : index
    %c0_22 = arith.constant 0 : index
    %33 = vector.load %arg2[%c5, %c0_21, %c0_22] : memref<9x54x6xf32, #tpu.memory_space<vmem>>, vector<1x54x6xf32>
    %34 = vector.shape_cast %33 : vector<1x54x6xf32> to vector<54x6xf32>
    %cst_23 = arith.constant dense<0.000000e+00> : vector<48x6xf32>
    %35 = tpu.matmul %2, %34, %cst_23 {dimension_numbers = #tpu.dot_dimension_numbers<[1], [0], [0], [1], [0, 0, 1, 1], [], []>} : vector<48x54xf32>, vector<54x6xf32>, vector<48x6xf32> -> vector<48x6xf32>
    %cst_24 = arith.constant dense<0.000000e+00> : vector<48x6xf32>
    %36 = tpu.matmul %3, %34, %cst_24 {dimension_numbers = #tpu.dot_dimension_numbers<[1], [0], [0], [1], [0, 0, 1, 1], [], []>} : vector<48x54xf32>, vector<54x6xf32>, vector<48x6xf32> -> vector<48x6xf32>
    %37 = arith.addf %35, %36 : vector<48x6xf32>
    %38 = arith.maximumf %32, %37 : vector<48x6xf32>
    %c6 = arith.constant 6 : index
    %c0_25 = arith.constant 0 : index
    %c0_26 = arith.constant 0 : index
    %39 = vector.load %arg2[%c6, %c0_25, %c0_26] : memref<9x54x6xf32, #tpu.memory_space<vmem>>, vector<1x54x6xf32>
    %40 = vector.shape_cast %39 : vector<1x54x6xf32> to vector<54x6xf32>
    %cst_27 = arith.constant dense<0.000000e+00> : vector<48x6xf32>
    %41 = tpu.matmul %2, %40, %cst_27 {dimension_numbers = #tpu.dot_dimension_numbers<[1], [0], [0], [1], [0, 0, 1, 1], [], []>} : vector<48x54xf32>, vector<54x6xf32>, vector<48x6xf32> -> vector<48x6xf32>
    %cst_28 = arith.constant dense<0.000000e+00> : vector<48x6xf32>
    %42 = tpu.matmul %3, %40, %cst_28 {dimension_numbers = #tpu.dot_dimension_numbers<[1], [0], [0], [1], [0, 0, 1, 1], [], []>} : vector<48x54xf32>, vector<54x6xf32>, vector<48x6xf32> -> vector<48x6xf32>
    %43 = arith.addf %41, %42 : vector<48x6xf32>
    %44 = arith.maximumf %38, %43 : vector<48x6xf32>
    %c7 = arith.constant 7 : index
    %c0_29 = arith.constant 0 : index
    %c0_30 = arith.constant 0 : index
    %45 = vector.load %arg2[%c7, %c0_29, %c0_30] : memref<9x54x6xf32, #tpu.memory_space<vmem>>, vector<1x54x6xf32>
    %46 = vector.shape_cast %45 : vector<1x54x6xf32> to vector<54x6xf32>
    %cst_31 = arith.constant dense<0.000000e+00> : vector<48x6xf32>
    %47 = tpu.matmul %2, %46, %cst_31 {dimension_numbers = #tpu.dot_dimension_numbers<[1], [0], [0], [1], [0, 0, 1, 1], [], []>} : vector<48x54xf32>, vector<54x6xf32>, vector<48x6xf32> -> vector<48x6xf32>
    %cst_32 = arith.constant dense<0.000000e+00> : vector<48x6xf32>
    %48 = tpu.matmul %3, %46, %cst_32 {dimension_numbers = #tpu.dot_dimension_numbers<[1], [0], [0], [1], [0, 0, 1, 1], [], []>} : vector<48x54xf32>, vector<54x6xf32>, vector<48x6xf32> -> vector<48x6xf32>
    %49 = arith.addf %47, %48 : vector<48x6xf32>
    %50 = arith.maximumf %44, %49 : vector<48x6xf32>
    %c8 = arith.constant 8 : index
    %c0_33 = arith.constant 0 : index
    %c0_34 = arith.constant 0 : index
    %51 = vector.load %arg2[%c8, %c0_33, %c0_34] : memref<9x54x6xf32, #tpu.memory_space<vmem>>, vector<1x54x6xf32>
    %52 = vector.shape_cast %51 : vector<1x54x6xf32> to vector<54x6xf32>
    %cst_35 = arith.constant dense<0.000000e+00> : vector<48x6xf32>
    %53 = tpu.matmul %2, %52, %cst_35 {dimension_numbers = #tpu.dot_dimension_numbers<[1], [0], [0], [1], [0, 0, 1, 1], [], []>} : vector<48x54xf32>, vector<54x6xf32>, vector<48x6xf32> -> vector<48x6xf32>
    %cst_36 = arith.constant dense<0.000000e+00> : vector<48x6xf32>
    %54 = tpu.matmul %3, %52, %cst_36 {dimension_numbers = #tpu.dot_dimension_numbers<[1], [0], [0], [1], [0, 0, 1, 1], [], []>} : vector<48x54xf32>, vector<54x6xf32>, vector<48x6xf32> -> vector<48x6xf32>
    %55 = arith.addf %53, %54 : vector<48x6xf32>
    %56 = arith.maximumf %50, %55 : vector<48x6xf32>
    %c0_37 = arith.constant 0 : index
    %c0_38 = arith.constant 0 : index
    %57 = vector.load %arg3[%c0_37, %c0_38] : memref<48x6xf32, #tpu.memory_space<vmem>>, vector<48x6xf32>
    tpu.vector_store %arg3[%c0_37, %c0_38], %56 {strides = array<i32>} : memref<48x6xf32, #tpu.memory_space<vmem>>, vector<48x6xf32>,
    return
  }
  func.func @transform_0(%arg0: i32) -> (i32, i32) {
    %c0_i32 = arith.constant 0 : i32
    %c0_i32_0 = arith.constant 0 : i32
    return %arg0, %c0_i32 : i32, i32
  }
  func.func @transform_1(%arg0: i32) -> (i32, i32, i32) {
    %c0_i32 = arith.constant 0 : i32
    %c0_i32_0 = arith.constant 0 : i32
    %c0_i32_1 = arith.constant 0 : i32
    %c0_i32_2 = arith.constant 0 : i32
    return %c0_i32, %c0_i32_0, %c0_i32_1 : i32, i32, i32
  }
  func.func @transform_2(%arg0: i32) -> (i32, i32) {
    %c0_i32 = arith.constant 0 : i32
    %c0_i32_0 = arith.constant 0 : i32
    return %arg0, %c0_i32 : i32, i32
  }
}

</mosaic_0001>

<bundles_post_ra>
// kernel: maxpool2d_ceil.1
= control target key start
LH: loop header
LB: loop body
LE: loop exit
PB: predicated region body
PF: predicated region fallthrough
CT: control target
= control target key end

     0   :  { %vm58_vm0 = vcmask 1045504   ;;  %vm39_vm1 = vcmask 441344   ;;  %vm1926_vm2 = vcmask 48128   ;;  %s3448_s1 = inlined_call_operand.vmem [shape: f32[9,54,6], index: 1, kind: input, shape index: {}]   ;;  %s3449_s0 = inlined_call_operand.vmem [shape: f32[48,54], index: 0, kind: input, shape index: {}]   ;;  %s3450_s2 = inlined_call_operand.vmem [shape: f32[48,6], index: 2, kind: output, shape index: {}]  }
   0x1   :  { %v38_v0 = vld [vmem:[%s3448_s1 + $0x30] sm:$0x3f]  ;;  %v37_v1 = vld [vmem:[%s3448_s1 + $0x28] sm:$0xff]  ;;  %v36_v2 = vld [vmem:[%s3448_s1 + $0x20] sm:$0xff] }
   0x2   :  { %2353 = vmatprep.subr.msk.mxu0 %vm58_vm0, %v38_v0  ;;  %2376 = vmatprep.subr.msk.mxu1 %vm58_vm0, %v38_v0  ;;  %v11_v3 = vld [vmem:[%s3449_s0] sm:$0xff]  ;;  %v12_v4 = vld [vmem:[%s3449_s0 + $0x8] sm:$0xff]  ;;  %v35_v6 = vld [vmem:[%s3448_s1 + $0x18] sm:$0xff] }
   0x3   :  { %2354 = vmatpush3.msk.msra.mxu0 %vm58_vm0, %v38_v0  ;;  %2377 = vmatpush3.msk.msra.mxu1 %vm58_vm0, %v38_v0  ;;  %v17_v5 = vpack.c.bf16 %v12_v4, %v11_v3  ;;  %v34_v7 = vld [vmem:[%s3448_s1 + $0x10] sm:$0xff]  ;;  %v14_v10 = vld [vmem:[%s3449_s0 + $0x18] sm:$0xff]  ;;  %v33_v11 = vld [vmem:[%s3448_s1 + $0x8] sm:$0xff] }
   0x4   :  { %2355 = vmatprep.subr.mxu0 %v37_v1  ;;  %2378 = vmatprep.subr.mxu1 %v37_v1  ;;  %v13_v9 = vld [vmem:[%s3449_s0 + $0x10] sm:$0xff]  ;;  %v32_v14 = vld [vmem:[%s3448_s1] sm:$0xff]  ;;  %v16_v18 = vld [vmem:[%s3449_s0 + $0x28] sm:$0xff] }
   0x5   :  { %2356 = vmatpush3.msra.mxu0 %v37_v1  ;;  %2379 = vmatpush3.msra.mxu1 %v37_v1  ;;  %v2807_v8 = vunpack.c.l.bf16 %v17_v5  ;;  %v2818_v12 = vunpack.c.h.bf16 %v17_v5  ;;  %v18_v13 = vpack.c.bf16 %v14_v10, %v13_v9  ;;  %v15_v17 = vld [vmem:[%s3449_s0 + $0x20] sm:$0xff]  ;;  %v1957_v20 = vld [vmem:[%s3448_s1 + $0x68] sm:$0x3f]  ;;  %v1955_v25 = vld [vmem:[%s3448_s1 + $0x58] sm:$0xff] }
   0x6   :  { %2357 = vmatprep.subr.mxu0 %v36_v2  ;;  %2380 = vmatprep.subr.mxu1 %v36_v2  ;;  %v19_v22 = vpack.c.bf16 %v16_v18, %v15_v17  ;;  %v1956_v23 = vld [vmem:[%s3448_s1 + $0x60] sm:$0xff]  ;;  %v1954_v29 = vld [vmem:[%s3448_s1 + $0x50] sm:$0xff]  ;;  %v1953_v31 = vld [vmem:[%s3448_s1 + $0x48] sm:$0xff] }
   0x7   :  { %2358 = vmatpush3.msra.mxu0 %v36_v2  ;;  %2381 = vmatpush3.msra.mxu1 %v36_v2  ;;  %v2824_v15 = vsub.f32 %v11_v3, %v2807_v8  ;;  %v2827_v16 = vsub.f32 %v12_v4, %v2818_v12  ;;  %v2835_v19 = vunpack.c.l.bf16 %v18_v13  ;;  %v2844_v21 = vunpack.c.h.bf16 %v18_v13  ;;  %v1952_v33 = vld [vmem:[%s3448_s1 + $0x40] sm:$0xff]  ;;  %v1951_v34 = vld [vmem:[%s3448_s1 + $0x38] sm:$0xff]  ;;  %v1976_v37 = vld [vmem:[%s3448_s1 + $0x90] sm:$0xff] }
   0x8   :  { %2359 = vmatprep.subr.mxu0 %v35_v6  ;;  %2382 = vmatprep.subr.mxu1 %v35_v6  ;;  %v2866_v27 = vunpack.c.l.bf16 %v19_v22  ;;  %v2872_v28 = vunpack.c.h.bf16 %v19_v22  ;;  %v1978_v35 = vld [vmem:[%s3448_s1 + $0xa0] sm:$0x3f]  ;;  %v1977_v36 = vld [vmem:[%s3448_s1 + $0x98] sm:$0xff]  ;;  %v1975_v38 = vld [vmem:[%s3448_s1 + $0x88] sm:$0xff] }
   0x9   :  { %2360 = vmatpush3.msra.mxu0 %v35_v6  ;;  %2383 = vmatpush3.msra.mxu1 %v35_v6  ;;  %v2856_v24 = vsub.f32 %v13_v9, %v2835_v19  ;;  %v2864_v26 = vsub.f32 %v14_v10, %v2844_v21  ;;  %v1974_v39 = vld [vmem:[%s3448_s1 + $0x80] sm:$0xff]  ;;  %v1973_v40 = vld [vmem:[%s3448_s1 + $0x78] sm:$0xff]  ;;  %v1972_v41 = vld [vmem:[%s3448_s1 + $0x70] sm:$0xff] }
   0xa   :  { %2361 = vmatprep.subr.mxu0 %v34_v7  ;;  %2384 = vmatprep.subr.mxu1 %v34_v7  ;;  %v2882_v30 = vsub.f32 %v15_v17, %v2866_v27  ;;  %v2888_v32 = vsub.f32 %v16_v18, %v2872_v28  ;;  %v1999_v42 = vld [vmem:[%s3448_s1 + $0xd8] sm:$0x3f]  ;;  %v1998_v43 = vld [vmem:[%s3448_s1 + $0xd0] sm:$0xff]  ;;  %v1997_v44 = vld [vmem:[%s3448_s1 + $0xc8] sm:$0xff] }
   0xb   :  { %2362 = vmatpush3.msra.mxu0 %v34_v7  ;;  %2385 = vmatpush3.msra.mxu1 %v34_v7  ;;  %v1996_v45 = vld [vmem:[%s3448_s1 + $0xc0] sm:$0xff]  ;;  %v1995_v46 = vld [vmem:[%s3448_s1 + $0xb8] sm:$0xff]  ;;  %v1994_v47 = vld [vmem:[%s3448_s1 + $0xb0] sm:$0xff] }
   0xc   :  { %2363 = vmatprep.subr.mxu0 %v33_v11  ;;  %2386 = vmatprep.subr.mxu1 %v33_v11  ;;  %v1993_v48 = vld [vmem:[%s3448_s1 + $0xa8] sm:$0xff]  ;;  %v2020_v49 = vld [vmem:[%s3448_s1 + $0x110] sm:$0x3f]  ;;  %v2018_v51 = vld [vmem:[%s3448_s1 + $0x100] sm:$0xff] }
   0xd   :  { %2364 = vmatpush3.msra.mxu0 %v33_v11  ;;  %2387 = vmatpush3.msra.mxu1 %v33_v11  ;;  %v2019_v50 = vld [vmem:[%s3448_s1 + $0x108] sm:$0xff]  ;;  %v2017_v52 = vld [vmem:[%s3448_s1 + $0xf8] sm:$0xff]  ;;  %v2016_v53 = vld [vmem:[%s3448_s1 + $0xf0] sm:$0xff] }
   0xe   :  { %2365 = vmatprep.subr.mxu0 %v32_v14  ;;  %2388 = vmatprep.subr.mxu1 %v32_v14  ;;  %v2015_v54 = vld [vmem:[%s3448_s1 + $0xe8] sm:$0xff]  ;;  %v2014_v55 = vld [vmem:[%s3448_s1 + $0xe0] sm:$0xff]  ;;  %v2039_v58 = vld [vmem:[%s3448_s1 + $0x138] sm:$0xff] }
   0xf   :  { %2366 = vmatpush3.msra.mxu0 %v32_v14  ;;  %2367 = vmatprep.mubr.msk.f32.mxu0 %vm39_vm1, %v2824_v15  ;;  %v2041_v56 = vld [vmem:[%s3448_s1 + $0x148] sm:$0x3f]  ;;  %v2040_v57 = vld [vmem:[%s3448_s1 + $0x140] sm:$0xff]  ;;  %v2038_v59 = vld [vmem:[%s3448_s1 + $0x130] sm:$0xff] }
  0x10   :  { %2389 = vmatpush3.msra.mxu1 %v32_v14  ;;  %2390 = vmatprep.mubr.msk.f32.mxu1 %vm39_vm1, %v2807_v8  ;;  %v2037_v60 = vld [vmem:[%s3448_s1 + $0x128] sm:$0xff]  ;;  %v2036_v61 = vld [vmem:[%s3448_s1 + $0x120] sm:$0xff]  ;;  %v2035_v62 = vld [vmem:[%s3448_s1 + $0x118] sm:$0xff] }
  0x11   :  { %2368 = vmatmul.mubr.msk.f32.vlgmr.msra.gmra.mxu0 %vm39_vm1, %v2827_v16  ;;  %2391 = vmatmul.mubr.msk.f32.vlgmr.msra.gmra.mxu1 %vm39_vm1, %v2818_v12  ;;  %v2062_v63 = vld [vmem:[%s3448_s1 + $0x180] sm:$0x3f]  ;;  %v2061_v0 = vld [vmem:[%s3448_s1 + $0x178] sm:$0xff]  ;;  %v2060_v1 = vld [vmem:[%s3448_s1 + $0x170] sm:$0xff] }
  0x12   :  { %2399 = vmatprep.subr.msk.mxu0 %vm58_vm0, %v1957_v20  ;;  %2422 = vmatprep.subr.msk.mxu1 %vm58_vm0, %v1957_v20  ;;  %v2059_v2 = vld [vmem:[%s3448_s1 + $0x168] sm:$0xff]  ;;  %v2058_v3 = vld [vmem:[%s3448_s1 + $0x160] sm:$0xff]  ;;  %v2057_v4 = vld [vmem:[%s3448_s1 + $0x158] sm:$0xff] }
  0x13   :  { %2400 = vmatpush3.msk.msra.mxu0 %vm58_vm0, %v1957_v20  ;;  %2423 = vmatpush3.msk.msra.mxu1 %vm58_vm0, %v1957_v20  ;;  %v2056_v5 = vld [vmem:[%s3448_s1 + $0x150] sm:$0xff]  ;;  %v2083_v6 = vld [vmem:[%s3448_s1 + $0x1b8] sm:$0x3f]  ;;  %v2081_v9 = vld [vmem:[%s3448_s1 + $0x1a8] sm:$0xff] }
  0x14   :  { %2401 = vmatprep.subr.mxu0 %v1956_v23  ;;  %2424 = vmatprep.subr.mxu1 %v1956_v23  ;;  %v2082_v7 = vld [vmem:[%s3448_s1 + $0x1b0] sm:$0xff]  ;;  %v2080_v10 = vld [vmem:[%s3448_s1 + $0x1a0] sm:$0xff]  ;;  %v2079_v11 = vld [vmem:[%s3448_s1 + $0x198] sm:$0xff] }
  0x15   :  { %2402 = vmatpush3.msra.mxu0 %v1956_v23  ;;  %2425 = vmatpush3.msra.mxu1 %v1956_v23  ;;  %v2078_v13 = vld [vmem:[%s3448_s1 + $0x190] sm:$0xff]  ;;  %v2077_v14 = vld [vmem:[%s3448_s1 + $0x188] sm:$0xff]  ;;  %v2102_v20 = vld [vmem:[%s3448_s1 + $0x1e0] sm:$0xff] }
  0x16   :  { %2370 = vmatprep.mubr.msk.f32.mxu0 %vm39_vm1, %v2856_v24  ;;  %2393 = vmatprep.mubr.msk.f32.mxu1 %vm39_vm1, %v2835_v19  ;;  %v2104_v17 = vld [vmem:[%s3448_s1 + $0x1f0] sm:$0x3f]  ;;  %v2103_v18 = vld [vmem:[%s3448_s1 + $0x1e8] sm:$0xff]  ;;  %v2101_v22 = vld [vmem:[%s3448_s1 + $0x1d8] sm:$0xff] }
  0x17   :  { %2403 = vmatprep.subr.mxu0 %v1955_v25  ;;  %2426 = vmatprep.subr.mxu1 %v1955_v25  ;;  %v2100_v23 = vld [vmem:[%s3448_s1 + $0x1d0] sm:$0xff] }
  0x18   :  { %2371 = vmatmul.mubr.msk.f32.gmra.mxu0 %vm39_vm1, %v2864_v26  ;;  %2394 = vmatmul.mubr.msk.f32.gmra.mxu1 %vm39_vm1, %v2844_v21 }
  0x19   :  { %2404 = vmatpush3.msra.mxu0 %v1955_v25  ;;  %2427 = vmatpush3.msra.mxu1 %v1955_v25  ;;  %v2099_v25 = vld [vmem:[%s3448_s1 + $0x1c8] sm:$0xff] }
  0x1a   :  { %2405 = vmatprep.subr.mxu0 %v1954_v29  ;;  %2428 = vmatprep.subr.mxu1 %v1954_v29 }
  0x1b   :  { %2406 = vmatpush3.msra.mxu0 %v1954_v29  ;;  %2429 = vmatpush3.msra.mxu1 %v1954_v29  ;;  %v2098_v29 = vld [vmem:[%s3448_s1 + $0x1c0] sm:$0xff] }
  0x1c   :  { %2373 = vmatprep.mubr.msk.f32.mxu0 %vm39_vm1, %v2882_v30  ;;  %2396 = vmatprep.mubr.msk.f32.mxu1 %vm39_vm1, %v2866_v27 }
  0x1d   :  { %2407 = vmatprep.subr.mxu0 %v1953_v31  ;;  %2430 = vmatprep.subr.mxu1 %v1953_v31 }
  0x1e   :  { %2374 = vmatmul.mubr.msk.f32.gmra.mxu0 %vm39_vm1, %v2888_v32  ;;  %2397 = vmatmul.mubr.msk.f32.gmra.mxu1 %vm39_vm1, %v2872_v28 }
  0x1f   :  { %2408 = vmatpush3.msra.mxu0 %v1953_v31  ;;  %2431 = vmatpush3.msra.mxu1 %v1953_v31 }
  0x20   :  { %2409 = vmatprep.subr.mxu0 %v1952_v33  ;;  %2432 = vmatprep.subr.mxu1 %v1952_v33 }
  0x21   :  { %2410 = vmatpush3.msra.mxu0 %v1952_v33  ;;  %2433 = vmatpush3.msra.mxu1 %v1952_v33 }
  0x22   :  { %2411 = vmatprep.subr.mxu0 %v1951_v34  ;;  %2434 = vmatprep.subr.mxu1 %v1951_v34 }
  0x23   :  { %2412 = vmatpush3.msra.mxu0 %v1951_v34  ;;  %2413 = vmatprep.mubr.msk.f32.mxu0 %vm39_vm1, %v2824_v15 }
  0x24   :  { %2435 = vmatpush3.msra.mxu1 %v1951_v34  ;;  %2436 = vmatprep.mubr.msk.f32.mxu1 %vm39_vm1, %v2807_v8 }
  0x25   :  { %2414 = vmatmul.mubr.msk.f32.vlgmr.msra.gmra.mxu0 %vm39_vm1, %v2827_v16  ;;  %2437 = vmatmul.mubr.msk.f32.vlgmr.msra.gmra.mxu1 %vm39_vm1, %v2818_v12 }
  0x26   :  { %2445 = vmatprep.subr.msk.mxu0 %vm58_vm0, %v1978_v35  ;;  %2468 = vmatprep.subr.msk.mxu1 %vm58_vm0, %v1978_v35 }
  0x27   :  { %2446 = vmatpush3.msk.msra.mxu0 %vm58_vm0, %v1978_v35  ;;  %2469 = vmatpush3.msk.msra.mxu1 %vm58_vm0, %v1978_v35 }
  0x28   :  { %2447 = vmatprep.subr.mxu0 %v1977_v36  ;;  %2470 = vmatprep.subr.mxu1 %v1977_v36 }
  0x29   :  { %2416 = vmatprep.mubr.msk.f32.mxu0 %vm39_vm1, %v2856_v24  ;;  %2439 = vmatprep.mubr.msk.f32.mxu1 %vm39_vm1, %v2835_v19 }
  0x2a   :  { %2448 = vmatpush3.msra.mxu0 %v1977_v36  ;;  %2471 = vmatpush3.msra.mxu1 %v1977_v36 }
  0x2b   :  { %2417 = vmatmul.mubr.msk.f32.gmra.mxu0 %vm39_vm1, %v2864_v26  ;;  %2440 = vmatmul.mubr.msk.f32.gmra.mxu1 %vm39_vm1, %v2844_v21 }
  0x2c   :  { %2449 = vmatprep.subr.mxu0 %v1976_v37  ;;  %2472 = vmatprep.subr.mxu1 %v1976_v37 }
  0x2d   :  { %2450 = vmatpush3.msra.mxu0 %v1976_v37  ;;  %2473 = vmatpush3.msra.mxu1 %v1976_v37 }
  0x2e   :  { %2451 = vmatprep.subr.mxu0 %v1975_v38  ;;  %2474 = vmatprep.subr.mxu1 %v1975_v38 }
  0x2f   :  { %2419 = vmatprep.mubr.msk.f32.mxu0 %vm39_vm1, %v2882_v30  ;;  %2442 = vmatprep.mubr.msk.f32.mxu1 %vm39_vm1, %v2866_v27 }
  0x30   :  { %2452 = vmatpush3.msra.mxu0 %v1975_v38  ;;  %2475 = vmatpush3.msra.mxu1 %v1975_v38 }
  0x31   :  { %2420 = vmatmul.mubr.msk.f32.gmra.mxu0 %vm39_vm1, %v2888_v32  ;;  %2443 = vmatmul.mubr.msk.f32.gmra.mxu1 %vm39_vm1, %v2872_v28 }
  0x32   :  { %2453 = vmatprep.subr.mxu0 %v1974_v39  ;;  %2476 = vmatprep.subr.mxu1 %v1974_v39 }
  0x33   :  { %2454 = vmatpush3.msra.mxu0 %v1974_v39  ;;  %2477 = vmatpush3.msra.mxu1 %v1974_v39 }
  0x34   :  { %2455 = vmatprep.subr.mxu0 %v1973_v40  ;;  %2478 = vmatprep.subr.mxu1 %v1973_v40 }
  0x35   :  { %2456 = vmatpush3.msra.mxu0 %v1973_v40  ;;  %2479 = vmatpush3.msra.mxu1 %v1973_v40 }
  0x36   :  { %2457 = vmatprep.subr.mxu0 %v1972_v41  ;;  %2480 = vmatprep.subr.mxu1 %v1972_v41 }
  0x37   :  { %2458 = vmatpush3.msra.mxu0 %v1972_v41  ;;  %2459 = vmatprep.mubr.msk.f32.mxu0 %vm39_vm1, %v2824_v15 }
  0x38   :  { %2481 = vmatpush3.msra.mxu1 %v1972_v41  ;;  %2482 = vmatprep.mubr.msk.f32.mxu1 %vm39_vm1, %v2807_v8 }
  0x39   :  { %2460 = vmatmul.mubr.msk.f32.vlgmr.msra.gmra.mxu0 %vm39_vm1, %v2827_v16  ;;  %2483 = vmatmul.mubr.msk.f32.vlgmr.msra.gmra.mxu1 %vm39_vm1, %v2818_v12 }
  0x3a   :  { %2491 = vmatprep.subr.msk.mxu0 %vm58_vm0, %v1999_v42  ;;  %2514 = vmatprep.subr.msk.mxu1 %vm58_vm0, %v1999_v42 }
  0x3b   :  { %2492 = vmatpush3.msk.msra.mxu0 %vm58_vm0, %v1999_v42  ;;  %2515 = vmatpush3.msk.msra.mxu1 %vm58_vm0, %v1999_v42 }
  0x3c   :  { %2493 = vmatprep.subr.mxu0 %v1998_v43  ;;  %2516 = vmatprep.subr.mxu1 %v1998_v43 }
  0x3d   :  { %2462 = vmatprep.mubr.msk.f32.mxu0 %vm39_vm1, %v2856_v24  ;;  %2485 = vmatprep.mubr.msk.f32.mxu1 %vm39_vm1, %v2835_v19 }
  0x3e   :  { %2494 = vmatpush3.msra.mxu0 %v1998_v43  ;;  %2517 = vmatpush3.msra.mxu1 %v1998_v43 }
  0x3f   :  { %2463 = vmatmul.mubr.msk.f32.gmra.mxu0 %vm39_vm1, %v2864_v26  ;;  %2486 = vmatmul.mubr.msk.f32.gmra.mxu1 %vm39_vm1, %v2844_v21 }
  0x40   :  { %2495 = vmatprep.subr.mxu0 %v1997_v44  ;;  %2518 = vmatprep.subr.mxu1 %v1997_v44 }
  0x41   :  { %2496 = vmatpush3.msra.mxu0 %v1997_v44  ;;  %2519 = vmatpush3.msra.mxu1 %v1997_v44 }
  0x42   :  { %2497 = vmatprep.subr.mxu0 %v1996_v45  ;;  %2520 = vmatprep.subr.mxu1 %v1996_v45 }
  0x43   :  { %2465 = vmatprep.mubr.msk.f32.mxu0 %vm39_vm1, %v2882_v30  ;;  %2488 = vmatprep.mubr.msk.f32.mxu1 %vm39_vm1, %v2866_v27 }
  0x44   :  { %2498 = vmatpush3.msra.mxu0 %v1996_v45  ;;  %2521 = vmatpush3.msra.mxu1 %v1996_v45 }
  0x45   :  { %2466 = vmatmul.mubr.msk.f32.gmra.mxu0 %vm39_vm1, %v2888_v32  ;;  %2489 = vmatmul.mubr.msk.f32.gmra.mxu1 %vm39_vm1, %v2872_v28 }
  0x46   :  { %2499 = vmatprep.subr.mxu0 %v1995_v46  ;;  %2522 = vmatprep.subr.mxu1 %v1995_v46 }
  0x47   :  { %2500 = vmatpush3.msra.mxu0 %v1995_v46  ;;  %2523 = vmatpush3.msra.mxu1 %v1995_v46 }
  0x48   :  { %2501 = vmatprep.subr.mxu0 %v1994_v47  ;;  %2524 = vmatprep.subr.mxu1 %v1994_v47 }
  0x49   :  { %2502 = vmatpush3.msra.mxu0 %v1994_v47  ;;  %2525 = vmatpush3.msra.mxu1 %v1994_v47 }
  0x4a   :  { %2503 = vmatprep.subr.mxu0 %v1993_v48  ;;  %2526 = vmatprep.subr.mxu1 %v1993_v48 }
  0x4b   :  { %2504 = vmatpush3.msra.mxu0 %v1993_v48  ;;  %2505 = vmatprep.mubr.msk.f32.mxu0 %vm39_vm1, %v2824_v15 }
  0x4c   :  { %2527 = vmatpush3.msra.mxu1 %v1993_v48  ;;  %2528 = vmatprep.mubr.msk.f32.mxu1 %vm39_vm1, %v2807_v8 }
  0x4d   :  { %2506 = vmatmul.mubr.msk.f32.vlgmr.msra.gmra.mxu0 %vm39_vm1, %v2827_v16  ;;  %2529 = vmatmul.mubr.msk.f32.vlgmr.msra.gmra.mxu1 %vm39_vm1, %v2818_v12 }
  0x4e   :  { %2537 = vmatprep.subr.msk.mxu0 %vm58_vm0, %v2020_v49  ;;  %2560 = vmatprep.subr.msk.mxu1 %vm58_vm0, %v2020_v49 }
  0x4f   :  { %2538 = vmatpush3.msk.msra.mxu0 %vm58_vm0, %v2020_v49  ;;  %2561 = vmatpush3.msk.msra.mxu1 %vm58_vm0, %v2020_v49 }
  0x50   :  { %2539 = vmatprep.subr.mxu0 %v2019_v50  ;;  %2562 = vmatprep.subr.mxu1 %v2019_v50 }
  0x51   :  { %2508 = vmatprep.mubr.msk.f32.mxu0 %vm39_vm1, %v2856_v24  ;;  %2531 = vmatprep.mubr.msk.f32.mxu1 %vm39_vm1, %v2835_v19 }
  0x52   :  { %2540 = vmatpush3.msra.mxu0 %v2019_v50  ;;  %2563 = vmatpush3.msra.mxu1 %v2019_v50 }
  0x53   :  { %2509 = vmatmul.mubr.msk.f32.gmra.mxu0 %vm39_vm1, %v2864_v26  ;;  %2532 = vmatmul.mubr.msk.f32.gmra.mxu1 %vm39_vm1, %v2844_v21 }
  0x54   :  { %2541 = vmatprep.subr.mxu0 %v2018_v51  ;;  %2564 = vmatprep.subr.mxu1 %v2018_v51 }
  0x55   :  { %2542 = vmatpush3.msra.mxu0 %v2018_v51  ;;  %2565 = vmatpush3.msra.mxu1 %v2018_v51 }
  0x56   :  { %2543 = vmatprep.subr.mxu0 %v2017_v52  ;;  %2566 = vmatprep.subr.mxu1 %v2017_v52 }
  0x57   :  { %2511 = vmatprep.mubr.msk.f32.mxu0 %vm39_vm1, %v2882_v30  ;;  %2534 = vmatprep.mubr.msk.f32.mxu1 %vm39_vm1, %v2866_v27 }
  0x58   :  { %2544 = vmatpush3.msra.mxu0 %v2017_v52  ;;  %2567 = vmatpush3.msra.mxu1 %v2017_v52 }
  0x59   :  { %2512 = vmatmul.mubr.msk.f32.gmra.mxu0 %vm39_vm1, %v2888_v32  ;;  %2535 = vmatmul.mubr.msk.f32.gmra.mxu1 %vm39_vm1, %v2872_v28 }
  0x5a   :  { %2545 = vmatprep.subr.mxu0 %v2016_v53  ;;  %2568 = vmatprep.subr.mxu1 %v2016_v53 }
  0x5b   :  { %2546 = vmatpush3.msra.mxu0 %v2016_v53  ;;  %2569 = vmatpush3.msra.mxu1 %v2016_v53 }
  0x5c   :  { %2547 = vmatprep.subr.mxu0 %v2015_v54  ;;  %2570 = vmatprep.subr.mxu1 %v2015_v54 }
  0x5d   :  { %2548 = vmatpush3.msra.mxu0 %v2015_v54  ;;  %2571 = vmatpush3.msra.mxu1 %v2015_v54 }
  0x5e   :  { %2549 = vmatprep.subr.mxu0 %v2014_v55  ;;  %2572 = vmatprep.subr.mxu1 %v2014_v55 }
  0x5f   :  { %2550 = vmatpush3.msra.mxu0 %v2014_v55  ;;  %2551 = vmatprep.mubr.msk.f32.mxu0 %vm39_vm1, %v2824_v15 }
  0x60   :  { %2573 = vmatpush3.msra.mxu1 %v2014_v55  ;;  %2574 = vmatprep.mubr.msk.f32.mxu1 %vm39_vm1, %v2807_v8 }
  0x61   :  { %2552 = vmatmul.mubr.msk.f32.vlgmr.msra.gmra.mxu0 %vm39_vm1, %v2827_v16  ;;  %2575 = vmatmul.mubr.msk.f32.vlgmr.msra.gmra.mxu1 %vm39_vm1, %v2818_v12 }
  0x62   :  { %2583 = vmatprep.subr.msk.mxu0 %vm58_vm0, %v2041_v56  ;;  %2606 = vmatprep.subr.msk.mxu1 %vm58_vm0, %v2041_v56 }
  0x63   :  { %2584 = vmatpush3.msk.msra.mxu0 %vm58_vm0, %v2041_v56  ;;  %2607 = vmatpush3.msk.msra.mxu1 %vm58_vm0, %v2041_v56 }
  0x64   :  { %2585 = vmatprep.subr.mxu0 %v2040_v57  ;;  %2608 = vmatprep.subr.mxu1 %v2040_v57 }
  0x65   :  { %2554 = vmatprep.mubr.msk.f32.mxu0 %vm39_vm1, %v2856_v24  ;;  %2577 = vmatprep.mubr.msk.f32.mxu1 %vm39_vm1, %v2835_v19 }
  0x66   :  { %2586 = vmatpush3.msra.mxu0 %v2040_v57  ;;  %2609 = vmatpush3.msra.mxu1 %v2040_v57 }
  0x67   :  { %2555 = vmatmul.mubr.msk.f32.gmra.mxu0 %vm39_vm1, %v2864_v26  ;;  %2578 = vmatmul.mubr.msk.f32.gmra.mxu1 %vm39_vm1, %v2844_v21 }
  0x68   :  { %2587 = vmatprep.subr.mxu0 %v2039_v58  ;;  %2610 = vmatprep.subr.mxu1 %v2039_v58 }
  0x69   :  { %2588 = vmatpush3.msra.mxu0 %v2039_v58  ;;  %2611 = vmatpush3.msra.mxu1 %v2039_v58 }
  0x6a   :  { %2589 = vmatprep.subr.mxu0 %v2038_v59  ;;  %2612 = vmatprep.subr.mxu1 %v2038_v59 }
  0x6b   :  { %2557 = vmatprep.mubr.msk.f32.mxu0 %vm39_vm1, %v2882_v30  ;;  %2580 = vmatprep.mubr.msk.f32.mxu1 %vm39_vm1, %v2866_v27 }
  0x6c   :  { %2590 = vmatpush3.msra.mxu0 %v2038_v59  ;;  %2613 = vmatpush3.msra.mxu1 %v2038_v59 }
  0x6d   :  { %2558 = vmatmul.mubr.msk.f32.gmra.mxu0 %vm39_vm1, %v2888_v32  ;;  %2581 = vmatmul.mubr.msk.f32.gmra.mxu1 %vm39_vm1, %v2872_v28 }
  0x6e   :  { %2591 = vmatprep.subr.mxu0 %v2037_v60  ;;  %2614 = vmatprep.subr.mxu1 %v2037_v60 }
  0x6f   :  { %2592 = vmatpush3.msra.mxu0 %v2037_v60  ;;  %2615 = vmatpush3.msra.mxu1 %v2037_v60 }
  0x70   :  { %2593 = vmatprep.subr.mxu0 %v2036_v61  ;;  %2616 = vmatprep.subr.mxu1 %v2036_v61 }
  0x71   :  { %2594 = vmatpush3.msra.mxu0 %v2036_v61  ;;  %2617 = vmatpush3.msra.mxu1 %v2036_v61 }
  0x72   :  { %2595 = vmatprep.subr.mxu0 %v2035_v62  ;;  %2618 = vmatprep.subr.mxu1 %v2035_v62 }
  0x73   :  { %2596 = vmatpush3.msra.mxu0 %v2035_v62  ;;  %2597 = vmatprep.mubr.msk.f32.mxu0 %vm39_vm1, %v2824_v15 }
  0x74   :  { %2619 = vmatpush3.msra.mxu1 %v2035_v62  ;;  %2620 = vmatprep.mubr.msk.f32.mxu1 %vm39_vm1, %v2807_v8 }
  0x75   :  { %2598 = vmatmul.mubr.msk.f32.vlgmr.msra.gmra.mxu0 %vm39_vm1, %v2827_v16  ;;  %2621 = vmatmul.mubr.msk.f32.vlgmr.msra.gmra.mxu1 %vm39_vm1, %v2818_v12 }
  0x76   :  { %2629 = vmatprep.subr.msk.mxu0 %vm58_vm0, %v2062_v63  ;;  %2652 = vmatprep.subr.msk.mxu1 %vm58_vm0, %v2062_v63 }
  0x77   :  { %2630 = vmatpush3.msk.msra.mxu0 %vm58_vm0, %v2062_v63  ;;  %2653 = vmatpush3.msk.msra.mxu1 %vm58_vm0, %v2062_v63 }
  0x78   :  { %2631 = vmatprep.subr.mxu0 %v2061_v0  ;;  %2654 = vmatprep.subr.mxu1 %v2061_v0 }
  0x79   :  { %2600 = vmatprep.mubr.msk.f32.mxu0 %vm39_vm1, %v2856_v24  ;;  %2623 = vmatprep.mubr.msk.f32.mxu1 %vm39_vm1, %v2835_v19 }
  0x7a   :  { %2632 = vmatpush3.msra.mxu0 %v2061_v0  ;;  %2655 = vmatpush3.msra.mxu1 %v2061_v0 }
  0x7b   :  { %2601 = vmatmul.mubr.msk.f32.gmra.mxu0 %vm39_vm1, %v2864_v26  ;;  %2624 = vmatmul.mubr.msk.f32.gmra.mxu1 %vm39_vm1, %v2844_v21 }
  0x7c   :  { %2633 = vmatprep.subr.mxu0 %v2060_v1  ;;  %2656 = vmatprep.subr.mxu1 %v2060_v1 }
  0x7d   :  { %2634 = vmatpush3.msra.mxu0 %v2060_v1  ;;  %2657 = vmatpush3.msra.mxu1 %v2060_v1 }
  0x7e   :  { %2635 = vmatprep.subr.mxu0 %v2059_v2  ;;  %2658 = vmatprep.subr.mxu1 %v2059_v2 }
  0x7f   :  { %2603 = vmatprep.mubr.msk.f32.mxu0 %vm39_vm1, %v2882_v30  ;;  %2626 = vmatprep.mubr.msk.f32.mxu1 %vm39_vm1, %v2866_v27 }
  0x80   :  { %2636 = vmatpush3.msra.mxu0 %v2059_v2  ;;  %2659 = vmatpush3.msra.mxu1 %v2059_v2 }
  0x81   :  { %2604 = vmatmul.mubr.msk.f32.gmra.mxu0 %vm39_vm1, %v2888_v32  ;;  %2627 = vmatmul.mubr.msk.f32.gmra.mxu1 %vm39_vm1, %v2872_v28 }
  0x82   :  { %2637 = vmatprep.subr.mxu0 %v2058_v3  ;;  %2660 = vmatprep.subr.mxu1 %v2058_v3 }
  0x83   :  { %2638 = vmatpush3.msra.mxu0 %v2058_v3  ;;  %2661 = vmatpush3.msra.mxu1 %v2058_v3 }
  0x84   :  { %2639 = vmatprep.subr.mxu0 %v2057_v4  ;;  %2662 = vmatprep.subr.mxu1 %v2057_v4 }
  0x85   :  { %2640 = vmatpush3.msra.mxu0 %v2057_v4  ;;  %2663 = vmatpush3.msra.mxu1 %v2057_v4 }
  0x86   :  { %2641 = vmatprep.subr.mxu0 %v2056_v5  ;;  %2664 = vmatprep.subr.mxu1 %v2056_v5 }
  0x87   :  { %2642 = vmatpush3.msra.mxu0 %v2056_v5  ;;  %2643 = vmatprep.mubr.msk.f32.mxu0 %vm39_vm1, %v2824_v15 }
  0x88   :  { %2665 = vmatpush3.msra.mxu1 %v2056_v5  ;;  %2666 = vmatprep.mubr.msk.f32.mxu1 %vm39_vm1, %v2807_v8 }
  0x89   :  { %2644 = vmatmul.mubr.msk.f32.vlgmr.msra.gmra.mxu0 %vm39_vm1, %v2827_v16  ;;  %2667 = vmatmul.mubr.msk.f32.vlgmr.msra.gmra.mxu1 %vm39_vm1, %v2818_v12 }
  0x8a   :  { %2675 = vmatprep.subr.msk.mxu0 %vm58_vm0, %v2083_v6  ;;  %2698 = vmatprep.subr.msk.mxu1 %vm58_vm0, %v2083_v6 }
  0x8b   :  { %2676 = vmatpush3.msk.msra.mxu0 %vm58_vm0, %v2083_v6  ;;  %2699 = vmatpush3.msk.msra.mxu1 %vm58_vm0, %v2083_v6 }
  0x8c   :  { %2677 = vmatprep.subr.mxu0 %v2082_v7  ;;  %2700 = vmatprep.subr.mxu1 %v2082_v7 }
  0x8d   :  { %2646 = vmatprep.mubr.msk.f32.mxu0 %vm39_vm1, %v2856_v24  ;;  %2669 = vmatprep.mubr.msk.f32.mxu1 %vm39_vm1, %v2835_v19 }
  0x8e   :  { %2678 = vmatpush3.msra.mxu0 %v2082_v7  ;;  %2701 = vmatpush3.msra.mxu1 %v2082_v7 }
  0x8f   :  { %2647 = vmatmul.mubr.msk.f32.gmra.mxu0 %vm39_vm1, %v2864_v26  ;;  %2670 = vmatmul.mubr.msk.f32.gmra.mxu1 %vm39_vm1, %v2844_v21 }
  0x90   :  { %2679 = vmatprep.subr.mxu0 %v2081_v9  ;;  %2702 = vmatprep.subr.mxu1 %v2081_v9 }
  0x91   :  { %2680 = vmatpush3.msra.mxu0 %v2081_v9  ;;  %2703 = vmatpush3.msra.mxu1 %v2081_v9 }
  0x92   :  { %2681 = vmatprep.subr.mxu0 %v2080_v10  ;;  %2704 = vmatprep.subr.mxu1 %v2080_v10 }
  0x93   :  { %2649 = vmatprep.mubr.msk.f32.mxu0 %vm39_vm1, %v2882_v30  ;;  %2672 = vmatprep.mubr.msk.f32.mxu1 %vm39_vm1, %v2866_v27 }
  0x94   :  { %2682 = vmatpush3.msra.mxu0 %v2080_v10  ;;  %2705 = vmatpush3.msra.mxu1 %v2080_v10 }
  0x95   :  { %2650 = vmatmul.mubr.msk.f32.gmra.mxu0 %vm39_vm1, %v2888_v32  ;;  %2673 = vmatmul.mubr.msk.f32.gmra.mxu1 %vm39_vm1, %v2872_v28 }
  0x96   :  { %2683 = vmatprep.subr.mxu0 %v2079_v11  ;;  %2706 = vmatprep.subr.mxu1 %v2079_v11 }
  0x97   :  { %2684 = vmatpush3.msra.mxu0 %v2079_v11  ;;  %2707 = vmatpush3.msra.mxu1 %v2079_v11 }
  0x98   :  { %2685 = vmatprep.subr.mxu0 %v2078_v13  ;;  %2708 = vmatprep.subr.mxu1 %v2078_v13 }
  0x99   :  { %2686 = vmatpush3.msra.mxu0 %v2078_v13  ;;  %2709 = vmatpush3.msra.mxu1 %v2078_v13 }
  0x9a   :  { %2687 = vmatprep.subr.mxu0 %v2077_v14  ;;  %2710 = vmatprep.subr.mxu1 %v2077_v14 }
  0x9b   :  { %2688 = vmatpush3.msra.mxu0 %v2077_v14  ;;  %2689 = vmatprep.mubr.msk.f32.mxu0 %vm39_vm1, %v2824_v15 }
  0x9c   :  { %2711 = vmatpush3.msra.mxu1 %v2077_v14  ;;  %2712 = vmatprep.mubr.msk.f32.mxu1 %vm39_vm1, %v2807_v8 }
  0x9d   :  { %2690 = vmatmul.mubr.msk.f32.vlgmr.msra.gmra.mxu0 %vm39_vm1, %v2827_v16  ;;  %2713 = vmatmul.mubr.msk.f32.vlgmr.msra.gmra.mxu1 %vm39_vm1, %v2818_v12 }
  0x9e   :  { %2721 = vmatprep.subr.msk.mxu0 %vm58_vm0, %v2104_v17  ;;  %2744 = vmatprep.subr.msk.mxu1 %vm58_vm0, %v2104_v17 }
  0x9f   :  { %2722 = vmatpush3.msk.msra.mxu0 %vm58_vm0, %v2104_v17  ;;  %2745 = vmatpush3.msk.msra.mxu1 %vm58_vm0, %v2104_v17 }
  0xa0   :  { %2723 = vmatprep.subr.mxu0 %v2103_v18  ;;  %2746 = vmatprep.subr.mxu1 %v2103_v18 }
  0xa1   :  { %2692 = vmatprep.mubr.msk.f32.mxu0 %vm39_vm1, %v2856_v24  ;;  %2715 = vmatprep.mubr.msk.f32.mxu1 %vm39_vm1, %v2835_v19 }
  0xa2   :  { %2724 = vmatpush3.msra.mxu0 %v2103_v18  ;;  %2747 = vmatpush3.msra.mxu1 %v2103_v18 }
  0xa3   :  { %2693 = vmatmul.mubr.msk.f32.gmra.mxu0 %vm39_vm1, %v2864_v26  ;;  %2716 = vmatmul.mubr.msk.f32.gmra.mxu1 %vm39_vm1, %v2844_v21 }
  0xa4   :  { %2725 = vmatprep.subr.mxu0 %v2102_v20  ;;  %2748 = vmatprep.subr.mxu1 %v2102_v20 }
  0xa5   :  { %2726 = vmatpush3.msra.mxu0 %v2102_v20  ;;  %2749 = vmatpush3.msra.mxu1 %v2102_v20 }
  0xa6   :  { %2727 = vmatprep.subr.mxu0 %v2101_v22  ;;  %2750 = vmatprep.subr.mxu1 %v2101_v22 }
  0xa7   :  { %2695 = vmatprep.mubr.msk.f32.mxu0 %vm39_vm1, %v2882_v30  ;;  %2718 = vmatprep.mubr.msk.f32.mxu1 %vm39_vm1, %v2866_v27 }
  0xa8   :  { %2728 = vmatpush3.msra.mxu0 %v2101_v22  ;;  %2751 = vmatpush3.msra.mxu1 %v2101_v22 }
  0xa9   :  { %2696 = vmatmul.mubr.msk.f32.gmra.mxu0 %vm39_vm1, %v2888_v32  ;;  %2719 = vmatmul.mubr.msk.f32.gmra.mxu1 %vm39_vm1, %v2872_v28 }
  0xaa   :  { %2729 = vmatprep.subr.mxu0 %v2100_v23  ;;  %2752 = vmatprep.subr.mxu1 %v2100_v23 }
  0xab   :  { %2730 = vmatpush3.msra.mxu0 %v2100_v23  ;;  %2753 = vmatpush3.msra.mxu1 %v2100_v23 }
  0xac   :  { %2731 = vmatprep.subr.mxu0 %v2099_v25  ;;  %2754 = vmatprep.subr.mxu1 %v2099_v25 }
  0xad   :  { %2732 = vmatpush3.msra.mxu0 %v2099_v25  ;;  %2755 = vmatpush3.msra.mxu1 %v2099_v25 }
  0xae   :  { %2733 = vmatprep.subr.mxu0 %v2098_v29  ;;  %2756 = vmatprep.subr.mxu1 %v2098_v29 }
  0xaf   :  { %2734 = vmatpush3.msra.mxu0 %v2098_v29  ;;  %2735 = vmatprep.mubr.msk.f32.mxu0 %vm39_vm1, %v2824_v15 }
  0xb0   :  { %2757 = vmatpush3.msra.mxu1 %v2098_v29  ;;  %2758 = vmatprep.mubr.msk.f32.mxu1 %vm39_vm1, %v2807_v8 }
  0xb1   :  { %2736 = vmatmul.mubr.msk.f32.vlgmr.msra.gmra.mxu0 %vm39_vm1, %v2827_v16  ;;  %2759 = vmatmul.mubr.msk.f32.vlgmr.msra.gmra.mxu1 %vm39_vm1, %v2818_v12 }
  0xb2   :  { %2738 = vmatprep.mubr.msk.f32.mxu0 %vm39_vm1, %v2856_v24  ;;  %2761 = vmatprep.mubr.msk.f32.mxu1 %vm39_vm1, %v2835_v19 }
  0xb5   :  { %2739 = vmatmul.mubr.msk.f32.gmra.mxu0 %vm39_vm1, %v2864_v26  ;;  %2762 = vmatmul.mubr.msk.f32.gmra.mxu1 %vm39_vm1, %v2844_v21 }
  0xb6   :  { %2741 = vmatprep.mubr.msk.f32.mxu0 %vm39_vm1, %v2882_v30  ;;  %2764 = vmatprep.mubr.msk.f32.mxu1 %vm39_vm1, %v2866_v27 }
  0xb9   :  { %2742 = vmatmul.mubr.msk.f32.gmra.mxu0 %vm39_vm1, %v2888_v32  ;;  %2765 = vmatmul.mubr.msk.f32.gmra.mxu1 %vm39_vm1, %v2872_v28 }
  0xd1   :  { %v2369_v8 = vpop.f32.mrf.mxu0  ;;  %v2392_v12 = vpop.f32.mrf.mxu1 }
  0xd2   :  { %v3271_v15 = vadd.f32 %v2392_v12, %v2369_v8 }
  0xd3   :  { %v128_v16 = vpop.f32.mrf.mxu0  ;;  %v241_v19 = vpop.f32.mrf.mxu1 }
  0xd4   :  { %v3273_v24 = vadd.f32 %v241_v19, %v128_v16 }
  0xd8   :  { %v2372_v21 = vpop.f32.mrf.mxu0  ;;  %v2395_v26 = vpop.f32.mrf.mxu1 }
  0xd9   :  { %v3275_v30 = vadd.f32 %v2395_v26, %v2372_v21 }
  0xda   :  { %v138_v31 = vpop.f32.mrf.mxu0  ;;  %v251_v27 = vpop.f32.mrf.mxu1 }
  0xdb   :  { %v3277_v33 = vadd.f32 %v251_v27, %v138_v31 }
  0xde   :  { %v2375_v32 = vpop.f32.mrf.mxu0  ;;  %v2398_v34 = vpop.f32.mrf.mxu1 }
  0xdf   :  { %v3279_v35 = vadd.f32 %v2398_v34, %v2375_v32 }
  0xe0   :  { %v148_v28 = vpop.f32.mrf.mxu0  ;;  %v261_v36 = vpop.f32.mrf.mxu1 }
  0xe1   :  { %v3281_v37 = vadd.f32 %v261_v36, %v148_v28 }
  0xe3   :  { %3453 = vst [vmem:[#allocation2_spill] sm:$0xff] %v3281_v37 }
  0xe5   :  { %v2415_v38 = vpop.f32.mrf.mxu0  ;;  %v2438_v39 = vpop.f32.mrf.mxu1 }
  0xe6   :  { %v3283_v40 = vadd.f32 %v2438_v39, %v2415_v38 }
  0xe7   :  { %v347_v41 = vpop.f32.mrf.mxu0  ;;  %v442_v42 = vpop.f32.mrf.mxu1 }
  0xe8   :  { %v3287_v44 = vadd.f32 %v442_v42, %v347_v41 }
  0xeb   :  { %v2418_v46 = vpop.f32.mrf.mxu0  ;;  %v2441_v47 = vpop.f32.mrf.mxu1 }
  0xec   :  { %v3291_v48 = vadd.f32 %v2441_v47, %v2418_v46 }
  0xed   :  { %v357_v49 = vpop.f32.mrf.mxu0  ;;  %v452_v50 = vpop.f32.mrf.mxu1 }
  0xee   :  { %v3295_v52 = vadd.f32 %v452_v50, %v357_v49 }
  0xf1   :  { %v2421_v54 = vpop.f32.mrf.mxu0  ;;  %v2444_v55 = vpop.f32.mrf.mxu1 }
  0xf2   :  { %v3299_v56 = vadd.f32 %v2444_v55, %v2421_v54 }
  0xf3   :  { %v367_v57 = vpop.f32.mrf.mxu0  ;;  %v462_v58 = vpop.f32.mrf.mxu1 }
  0xf4   :  { %v3303_v60 = vadd.f32 %v462_v58, %v367_v57 }
  0xf6   :  { %3454 = vst [vmem:[#allocation3_spill] sm:$0xff] %v3303_v60  ;;  %v3479_v60 = vmax.f32 %v3271_v15, %v3283_v40  ;;  %v3483_v15 = vmax.f32 %v3279_v35, %v3299_v56 }
  0xf9   :  { %v3307_v62 = vpop.f32.mrf.mxu0  ;;  %v3309_v63 = vpop.f32.mrf.mxu1 }
  0xfb   :  { %v3311_v0 = vpop.f32.mrf.mxu0  ;;  %v3313_v1 = vpop.f32.mrf.mxu1 }
  0xff   :  { %v3315_v2 = vpop.f32.mrf.mxu0  ;;  %v3317_v3 = vpop.f32.mrf.mxu1 }
 0x101   :  { %v3319_v4 = vpop.f32.mrf.mxu0  ;;  %v659_v5 = vpop.f32.mrf.mxu1 }
 0x105   :  { %v2467_v6 = vpop.f32.mrf.mxu0  ;;  %v2490_v7 = vpop.f32.mrf.mxu1 }
 0x107   :  { %v574_v9 = vpop.f32.mrf.mxu0  ;;  %v669_v10 = vpop.f32.mrf.mxu1 }
 0x10d   :  { %v2507_v11 = vpop.f32.mrf.mxu0  ;;  %v2530_v13 = vpop.f32.mrf.mxu1 }
 0x10f   :  { %v761_v14 = vpop.f32.mrf.mxu0  ;;  %v856_v17 = vpop.f32.mrf.mxu1 }
 0x113   :  { %v2510_v18 = vpop.f32.mrf.mxu0  ;;  %v2533_v20 = vpop.f32.mrf.mxu1 }
 0x115   :  { %v3321_v22 = vpop.f32.mrf.mxu0  ;;  %v3323_v23 = vpop.f32.mrf.mxu1 }
 0x119   :  { %v3325_v25 = vpop.f32.mrf.mxu0  ;;  %v3327_v29 = vpop.f32.mrf.mxu1 }
 0x11a   :  { %3455 = vst [vmem:[#allocation4_spill] sm:$0xff] %v3325_v25  ;;  %3456 = vst [vmem:[#allocation5_spill] sm:$0xff] %v3327_v29  ;;  %v872_v29 = vadd.f32 %v2533_v20, %v2510_v18  ;;  %v3480_v25 = vmax.f32 %v3273_v24, %v3287_v44 }
 0x11b   :  { %v3329_v8 = vpop.f32.mrf.mxu0  ;;  %v876_v12 = vpop.f32.mrf.mxu1 }
 0x11c   :  { %3457 = vst [vmem:[#allocation6_spill] sm:$0xff] %v3329_v8  ;;  %v857_v8 = vadd.f32 %v856_v17, %v761_v14 }
 0x121   :  { %v2553_v16 = vpop.f32.mrf.mxu0  ;;  %v2576_v19 = vpop.f32.mrf.mxu1 }
 0x123   :  { %v968_v21 = vpop.f32.mrf.mxu0  ;;  %v1063_v26 = vpop.f32.mrf.mxu1  ;;  %v3486_v44 = vld [vmem:[#allocation6_spill] sm:$0xff] }
 0x127   :  { %v3331_v31 = vpop.f32.mrf.mxu0  ;;  %v3333_v27 = vpop.f32.mrf.mxu1 }
 0x128   :  { %3458 = vst [vmem:[#allocation7_spill] sm:$0xff] %v3331_v31  ;;  %3459 = vst [vmem:[#allocation8_spill] sm:$0xff] %v3333_v27 }
 0x129   :  { %v3335_v32 = vpop.f32.mrf.mxu0  ;;  %v1073_v34 = vpop.f32.mrf.mxu1 }
 0x12a   :  { %3460 = vst [vmem:[#allocation9_spill] sm:$0xff] %v3335_v32  ;;  %v655_v32 = vadd.f32 %v3309_v63, %v3307_v62 }
 0x12c   :  { %v679_v37 = vmax.f32 %v3479_v60, %v655_v32  ;;  %v867_v60 = vadd.f32 %v3323_v23, %v3321_v22 }
 0x12d   :  { %v3337_v28 = vpop.f32.mrf.mxu0  ;;  %v3339_v36 = vpop.f32.mrf.mxu1 }
 0x12e   :  { %3461 = vst [vmem:[#allocation10_spill] sm:$0xff] %v3337_v28  ;;  %3462 = vst [vmem:[#allocation11_spill] sm:$0xff] %v3339_v36 }
 0x12f   :  { %v3341_v38 = vpop.f32.mrf.mxu0  ;;  %v3343_v39 = vpop.f32.mrf.mxu1  ;;  %v3490_v18 = vld [vmem:[#allocation7_spill] sm:$0xff]  ;;  %v3491_v35 = vld [vmem:[#allocation8_spill] sm:$0xff] }
 0x130   :  { %3463 = vst [vmem:[#allocation12_spill] sm:$0xff] %v3341_v38  ;;  %3464 = vst [vmem:[#allocation13_spill] sm:$0xff] %v3343_v39  ;;  %v1079_v56 = vadd.f32 %v3491_v35, %v3490_v18 }
 0x131   :  { %v3492_v20 = vld [vmem:[#allocation9_spill] sm:$0xff] }
 0x135   :  { %v2599_v41 = vpop.f32.mrf.mxu0  ;;  %v2622_v42 = vpop.f32.mrf.mxu1 }
 0x137   :  { %v1175_v46 = vpop.f32.mrf.mxu0  ;;  %v1270_v47 = vpop.f32.mrf.mxu1 }
 0x13b   :  { %v3345_v49 = vpop.f32.mrf.mxu0  ;;  %v3347_v50 = vpop.f32.mrf.mxu1 }
 0x13c   :  { %3465 = vst [vmem:[#allocation14_spill] sm:$0xff] %v3345_v49  ;;  %3466 = vst [vmem:[#allocation15_spill] sm:$0xff] %v3347_v50 }
 0x13d   :  { %v3349_v54 = vpop.f32.mrf.mxu0  ;;  %v3351_v55 = vpop.f32.mrf.mxu1 }
 0x13e   :  { %3467 = vst [vmem:[#allocation16_spill] sm:$0xff] %v3349_v54  ;;  %3468 = vst [vmem:[#allocation17_spill] sm:$0xff] %v3351_v55 }
 0x141   :  { %v3353_v57 = vpop.f32.mrf.mxu0  ;;  %v3355_v58 = vpop.f32.mrf.mxu1 }
 0x142   :  { %3469 = vst [vmem:[#allocation18_spill] sm:$0xff] %v3353_v57  ;;  %3470 = vst [vmem:[#allocation19_spill] sm:$0xff] %v3355_v58 }
 0x143   :  { %v3357_v61 = vpop.f32.mrf.mxu0  ;;  %v3359_v59 = vpop.f32.mrf.mxu1 }
 0x144   :  { %3471 = vst [vmem:[#allocation20_spill] sm:$0xff] %v3357_v61  ;;  %3472 = vst [vmem:[#allocation21_spill] sm:$0xff] %v3359_v59 }
 0x149   :  { %v2645_v53 = vpop.f32.mrf.mxu0  ;;  %v2668_v51 = vpop.f32.mrf.mxu1 }
 0x14b   :  { %v1382_v45 = vpop.f32.mrf.mxu0  ;;  %v1477_v43 = vpop.f32.mrf.mxu1 }
 0x14f   :  { %v2648_v39 = vpop.f32.mrf.mxu0  ;;  %v2671_v38 = vpop.f32.mrf.mxu1 }
 0x151   :  { %v3361_v49 = vpop.f32.mrf.mxu0  ;;  %v3363_v50 = vpop.f32.mrf.mxu1 }
 0x152   :  { %3473 = vst [vmem:[#allocation22_spill] sm:$0xff] %v3361_v49  ;;  %3474 = vst [vmem:[#allocation23_spill] sm:$0xff] %v3363_v50  ;;  %v650_v50 = vadd.f32 %v3313_v1, %v3311_v0  ;;  %v670_v49 = vadd.f32 %v669_v10, %v574_v9  ;;  %v3481_v1 = vmax.f32 %v3275_v30, %v3291_v48  ;;  %v3487_v10 = vld [vmem:[#allocation2_spill] sm:$0xff]  ;;  %v3488_v30 = vld [vmem:[#allocation3_spill] sm:$0xff] }
 0x153   :  { %v877_v9 = vadd.f32 %v876_v12, %v3486_v44  ;;  %v3489_v48 = vmax.f32 %v3487_v10, %v3488_v30  ;;  %v3494_v12 = vld [vmem:[#allocation11_spill] sm:$0xff] }
 0x154   :  { %v678_v0 = vmax.f32 %v3480_v25, %v650_v50  ;;  %v1074_v25 = vadd.f32 %v1073_v34, %v3492_v20  ;;  %v1271_v50 = vadd.f32 %v1270_v47, %v1175_v46 }
 0x155   :  { %v3365_v54 = vpop.f32.mrf.mxu0  ;;  %v3367_v55 = vpop.f32.mrf.mxu1 }
 0x156   :  { %3475 = vst [vmem:[#allocation24_spill] sm:$0xff] %v3365_v54  ;;  %3476 = vst [vmem:[#allocation25_spill] sm:$0xff] %v3367_v55  ;;  %v665_v54 = vadd.f32 %v3317_v3, %v3315_v2  ;;  %v660_v55 = vadd.f32 %v659_v5, %v3319_v4  ;;  %v3482_v3 = vmax.f32 %v3277_v33, %v3295_v52 }
 0x157   :  { %v3369_v57 = vpop.f32.mrf.mxu0  ;;  %v3371_v58 = vpop.f32.mrf.mxu1  ;;  %v1069_v5 = vadd.f32 %v2576_v19, %v2553_v16  ;;  %v1064_v33 = vadd.f32 %v1063_v26, %v968_v21  ;;  %v1276_v52 = vadd.f32 %v2622_v42, %v2599_v41  ;;  %v885_v14 = vmax.f32 %v678_v0, %v857_v8  ;;  %v3493_v19 = vld [vmem:[#allocation10_spill] sm:$0xff]  ;;  %v3496_v8 = vld [vmem:[#allocation15_spill] sm:$0xff]  ;;  %v3497_v0 = vld [vmem:[#allocation16_spill] sm:$0xff] }
 0x158   :  { %3477 = vst [vmem:[#allocation26_spill] sm:$0xff] %v3369_v57  ;;  %3478 = vst [vmem:[#allocation27_spill] sm:$0xff] %v3371_v58  ;;  %v675_v57 = vadd.f32 %v2490_v7, %v2467_v6  ;;  %v862_v58 = vadd.f32 %v2530_v13, %v2507_v11  ;;  %v681_v2 = vmax.f32 %v3481_v1, %v665_v54  ;;  %v3484_v6 = vld [vmem:[#allocation4_spill] sm:$0xff]  ;;  %v3485_v7 = vld [vmem:[#allocation5_spill] sm:$0xff] }
 0x159   :  { %v680_v4 = vmax.f32 %v3482_v3, %v660_v55  ;;  %v882_v24 = vadd.f32 %v3485_v7, %v3484_v6  ;;  %v682_v11 = vmax.f32 %v3489_v48, %v670_v49  ;;  %v1089_v32 = vadd.f32 %v3494_v12, %v3493_v19  ;;  %v3495_v26 = vld [vmem:[#allocation14_spill] sm:$0xff]  ;;  %v3498_v1 = vld [vmem:[#allocation17_spill] sm:$0xff] }
 0x15a   :  { %v683_v40 = vmax.f32 %v3483_v15, %v675_v57  ;;  %v886_v13 = vmax.f32 %v679_v37, %v862_v58  ;;  %v888_v17 = vmax.f32 %v681_v2, %v872_v29  ;;  %v1483_v54 = vadd.f32 %v2668_v51, %v2645_v53  ;;  %v3501_v7 = vld [vmem:[#allocation18_spill] sm:$0xff] }
 0x15b   :  { %v887_v49 = vmax.f32 %v680_v4, %v867_v60  ;;  %v889_v21 = vmax.f32 %v682_v11, %v877_v9  ;;  %v1286_v29 = vadd.f32 %v3496_v8, %v3495_v26  ;;  %v1092_v41 = vmax.f32 %v885_v14, %v1064_v33  ;;  %v3499_v4 = vld [vmem:[#allocation12_spill] sm:$0xff] }
 0x15c   :  { %v1093_v16 = vmax.f32 %v886_v13, %v1069_v5  ;;  %v890_v37 = vmax.f32 %v683_v40, %v882_v24  ;;  %v1478_v55 = vadd.f32 %v1477_v43, %v1382_v45  ;;  %v1095_v34 = vmax.f32 %v888_v17, %v1079_v56  ;;  %v3500_v40 = vld [vmem:[#allocation13_spill] sm:$0xff]  ;;  %v3502_v24 = vld [vmem:[#allocation19_spill] sm:$0xff]  ;;  %v3503_v45 = vld [vmem:[#allocation22_spill] sm:$0xff] }
 0x15d   :  { %v2691_v61 = vpop.f32.mrf.mxu0  ;;  %v2714_v59 = vpop.f32.mrf.mxu1  ;;  %v1094_v58 = vmax.f32 %v887_v49, %v1074_v25  ;;  %v1281_v2 = vadd.f32 %v3498_v1, %v3497_v0  ;;  %v1493_v3 = vadd.f32 %v2671_v38, %v2648_v39  ;;  %v1299_v51 = vmax.f32 %v1092_v41, %v1271_v50  ;;  %v3505_v11 = vld [vmem:[#allocation20_spill] sm:$0xff]  ;;  %v3506_v13 = vld [vmem:[#allocation21_spill] sm:$0xff] }
 0x15e   :  { %v1300_v42 = vmax.f32 %v1093_v16, %v1276_v52  ;;  %v1690_v57 = vadd.f32 %v2714_v59, %v2691_v61  ;;  %v1097_v46 = vmax.f32 %v890_v37, %v1089_v32  ;;  %v1084_v60 = vadd.f32 %v3500_v40, %v3499_v4  ;;  %v3504_v59 = vld [vmem:[#allocation23_spill] sm:$0xff]  ;;  %v3507_v33 = vld [vmem:[#allocation24_spill] sm:$0xff]  ;;  %v3508_v52 = vld [vmem:[#allocation25_spill] sm:$0xff] }
 0x15f   :  { %v1589_v36 = vpop.f32.mrf.mxu0  ;;  %v1684_v28 = vpop.f32.mrf.mxu1  ;;  %v1302_v6 = vmax.f32 %v1095_v34, %v1286_v29  ;;  %v1296_v43 = vadd.f32 %v3502_v24, %v3501_v7  ;;  %v1488_v61 = vadd.f32 %v3504_v59, %v3503_v45  ;;  %v1506_v10 = vmax.f32 %v1299_v51, %v1478_v55  ;;  %v3509_v32 = vld [vmem:[#allocation26_spill] sm:$0xff] }
 0x160   :  { %v1507_v53 = vmax.f32 %v1300_v42, %v1483_v54  ;;  %v1685_v47 = vadd.f32 %v1684_v28, %v1589_v36  ;;  %v1301_v48 = vmax.f32 %v1094_v58, %v1281_v2  ;;  %v1291_v28 = vadd.f32 %v3506_v13, %v3505_v11 }
 0x161   :  { %v1509_v36 = vmax.f32 %v1302_v6, %v1493_v3  ;;  %v1503_v14 = vadd.f32 %v3508_v52, %v3507_v33  ;;  %v1096_v16 = vmax.f32 %v889_v21, %v1084_v60  ;;  %v1304_v19 = vmax.f32 %v1097_v46, %v1296_v43 }
 0x162   :  { %v1714_v38 = vmax.f32 %v1507_v53, %v1690_v57  ;;  %v1713_v35 = vmax.f32 %v1506_v10, %v1685_v47  ;;  %v1508_v12 = vmax.f32 %v1301_v48, %v1488_v61 }
 0x163   :  { %v2694_v27 = vpop.f32.mrf.mxu0  ;;  %v2717_v31 = vpop.f32.mrf.mxu1 }
 0x164   :  { %v1700_v39 = vadd.f32 %v2717_v31, %v2694_v27  ;;  %v3510_v31 = vld [vmem:[#allocation27_spill] sm:$0xff] }
 0x165   :  { %v1599_v62 = vpop.f32.mrf.mxu0  ;;  %v1694_v63 = vpop.f32.mrf.mxu1  ;;  %v1498_v27 = vadd.f32 %v3510_v31, %v3509_v32 }
 0x166   :  { %v1695_v56 = vadd.f32 %v1694_v63, %v1599_v62  ;;  %v1716_v49 = vmax.f32 %v1509_v36, %v1700_v39  ;;  %v1303_v62 = vmax.f32 %v1096_v16, %v1291_v28  ;;  %v1511_v63 = vmax.f32 %v1304_v19, %v1503_v14 }
 0x168   :  { %v1715_v41 = vmax.f32 %v1508_v12, %v1695_v56  ;;  %v1510_v34 = vmax.f32 %v1303_v62, %v1498_v27 }
 0x169   :  { %v2697_v22 = vpop.f32.mrf.mxu0  ;;  %v2720_v23 = vpop.f32.mrf.mxu1 }
 0x16a   :  { %v1710_v37 = vadd.f32 %v2720_v23, %v2697_v22 }
 0x16b   :  { %v1609_v5 = vpop.f32.mrf.mxu0  ;;  %v1704_v15 = vpop.f32.mrf.mxu1 }
 0x16c   :  { %v1705_v42 = vadd.f32 %v1704_v15, %v1609_v5  ;;  %v1718_v58 = vmax.f32 %v1511_v63, %v1710_v37 }
 0x16e   :  { %v1717_v5 = vmax.f32 %v1510_v34, %v1705_v42 }
 0x171   :  { %v2737_v44 = vpop.f32.mrf.mxu0  ;;  %v2760_v9 = vpop.f32.mrf.mxu1 }
 0x172   :  { %v1897_v30 = vadd.f32 %v2760_v9, %v2737_v44 }
 0x173   :  { %v1796_v17 = vpop.f32.mrf.mxu0  ;;  %v1891_v18 = vpop.f32.mrf.mxu1 }
 0x174   :  { %v1921_v20 = vmax.f32 %v1714_v38, %v1897_v30  ;;  %v1892_v25 = vadd.f32 %v1891_v18, %v1796_v17 }
 0x175   :  { %v2740_v50 = vpop.f32.mrf.mxu0  ;;  %v2763_v54 = vpop.f32.mrf.mxu1 }
 0x176   :  { %1928 = vst.msk [vmem:[%s3450_s2 + $0x8] sm:$0xff] %vm1926_vm2, %v1921_v20  ;;  %v1920_v26 = vmax.f32 %v1713_v35, %v1892_v25  ;;  %v1907_v8 = vadd.f32 %v2763_v54, %v2740_v50 }
 0x177   :  { %v1806_v29 = vpop.f32.mrf.mxu0  ;;  %v1901_v21 = vpop.f32.mrf.mxu1 }
 0x178   :  { %1927 = vst.msk [vmem:[%s3450_s2] sm:$0xff] %vm1926_vm2, %v1920_v26  ;;  %v1923_v55 = vmax.f32 %v1716_v49, %v1907_v8  ;;  %v1902_v22 = vadd.f32 %v1901_v21, %v1806_v29 }
 0x179   :  { %v2743_v23 = vpop.f32.mrf.mxu0  ;;  %v2766_v57 = vpop.f32.mrf.mxu1 }
 0x17a   :  { %1930 = vst.msk [vmem:[%s3450_s2 + $0x18] sm:$0xff] %vm1926_vm2, %v1923_v55  ;;  %v1922_v0 = vmax.f32 %v1715_v41, %v1902_v22  ;;  %v1917_v1 = vadd.f32 %v2766_v57, %v2743_v23 }
 0x17b   :  { %v1816_v2 = vpop.f32.mrf.mxu0  ;;  %v1911_v3 = vpop.f32.mrf.mxu1 }
 0x17c   :  { %1929 = vst.msk [vmem:[%s3450_s2 + $0x10] sm:$0xff] %vm1926_vm2, %v1922_v0  ;;  %v1925_v15 = vmax.f32 %v1718_v58, %v1917_v1  ;;  %v1912_v46 = vadd.f32 %v1911_v3, %v1816_v2 }
 0x17e   :  { %1932 = vst.msk [vmem:[%s3450_s2 + $0x28] sm:$0xff] %vm1926_vm2, %v1925_v15  ;;  %v1924_v51 = vmax.f32 %v1717_v5, %v1912_v46 }
 0x180   :  { %1931 = vst.msk [vmem:[%s3450_s2 + $0x20] sm:$0xff] %vm1926_vm2, %v1924_v51 }

</bundles_post_ra>
